<compile_context>
chip_gen: v7x
topology: tpu7x:2x2x1
jax: 0.10.0
libtpu: 0.0.40
codegen_flags: <defaults>
</compile_context>

<pallas_src>
import jax
import jax.numpy as jnp
from jax.experimental import pallas as pl
from jax.experimental.pallas import tpu as pltpu


def _embedding_kernel(m_ref, x_ref, o_ref):
    # m_ref: SMEM (1, 1) scalar parameter (m_token), float32
    # x_ref: VMEM (TR, d) row tile of the flattened input
    # o_ref: VMEM (TR, 1 + d) row tile of the flattened output
    tr = x_ref.shape[0]
    m = m_ref[0, 0].astype(o_ref.dtype)
    tok_col = jnp.full((tr, 1), m, dtype=o_ref.dtype)
    # Build the whole tile in-register and store it with a single pass
    # (no second masked store over the leading vregs).
    o_ref[...] = jnp.concatenate(
        [tok_col, x_ref[...].astype(o_ref.dtype)], axis=1)


def module_embedding(x, m_token, *, row_tile=None):
    """x: (b, n, d); m_token: (1, 1, 1) parameter.

    Returns (b, n, 1 + d): m_token broadcast to (b, n, 1) concatenated with x on dim 2.
    """
    b, n, d = x.shape
    out_dtype = jnp.result_type(x.dtype, m_token.dtype)
    rows = b * n

    x2 = x.reshape(rows, d)
    # Pad rows up to a multiple of 8 so row tiles are always 8-aligned
    # (keeps pipelining / megacore sharding; output is sliced back below).
    rows_p = ((rows + 7) // 8) * 8
    if rows_p != rows:
        x2 = jnp.pad(x2, ((0, rows_p - rows), (0, 0)))

    m_flat = m_token.reshape(1, 1).astype(jnp.float32)

    in_itemsize = jnp.dtype(x2.dtype).itemsize
    out_itemsize = jnp.dtype(out_dtype).itemsize

    if row_tile is None:
        # ~8 MiB per (in + out) block; double-buffered => ~16 MiB, which sits
        # comfortably under the explicit 32 MiB vmem limit on v5e/v6e/v7x.
        bytes_per_row = in_itemsize * d + out_itemsize * (1 + d)
        budget_rows = max(8, (8 << 20) // max(1, bytes_per_row))
        row_tile = min(4096, budget_rows)
        row_tile = max(8, (row_tile // 8) * 8)

    tr = min(row_tile, rows_p)
    # Guarantee a multi-step grid when there is enough work: keeps the pipeline
    # busy and lets dimension_semantics=("parallel",) use both v7x TensorCores.
    if rows_p >= 16:
        tr = min(tr, max(8, ((rows_p // 2) // 8) * 8))
    tr = max(8, (tr // 8) * 8)

    grid = (pl.cdiv(rows_p, tr),)

    bytes_accessed = rows_p * d * in_itemsize + rows_p * (1 + d) * out_itemsize + 4

    out2 = pl.pallas_call(
        _embedding_kernel,
        out_shape=jax.ShapeDtypeStruct((rows_p, 1 + d), out_dtype),
        grid_spec=pl.GridSpec(
            grid=grid,
            in_specs=[
                pl.BlockSpec((1, 1), lambda i: (0, 0),
                             memory_space=pltpu.MemorySpace.SMEM),
                pl.BlockSpec((tr, d), lambda i: (i, 0)),
            ],
            out_specs=pl.BlockSpec((tr, 1 + d), lambda i: (i, 0)),
        ),
        compiler_params=pltpu.CompilerParams(
            dimension_semantics=("parallel",),
            vmem_limit_bytes=32 << 20,
        ),
        cost_estimate=pl.CostEstimate(
            flops=0, transcendentals=0, bytes_accessed=int(bytes_accessed)),
    )(m_flat, x2)

    return out2[:rows].reshape(b, n, 1 + d)


def _reference(x, m_token):
    b, n, _ = x.shape
    m_tokens = jnp.broadcast_to(m_token, (b, n, 1))
    return jnp.concatenate([m_tokens, x], axis=2)


if __name__ == "__main__":
    key = jax.random.PRNGKey(0)
    kx, km = jax.random.split(key)

    b, n, d = 2, 8, 32
    x = jax.random.normal(kx, (b, n, d), dtype=jnp.float32)
    # deterministic init of the nn.Parameter(torch.randn(1, 1, 1))
    m_token = jax.random.normal(km, (1, 1, 1), dtype=jnp.float32)

    out = module_embedding(x, m_token)
    out = jax.block_until_ready(out)

    ref = _reference(x, m_token)
    assert out.shape == (b, n, 1 + d), out.shape
    assert out.dtype == ref.dtype, (out.dtype, ref.dtype)
    assert jnp.allclose(out, ref, atol=1e-6), "mismatch vs reference"

    # Also exercise a ragged (rows % 8 != 0) case to cover the padding path.
    b2, n2, d2 = 3, 5, 24
    x2 = jax.random.normal(kx, (b2, n2, d2), dtype=jnp.float32)
    out2 = jax.block_until_ready(module_embedding(x2, m_token))
    ref2 = _reference(x2, m_token)
    assert out2.shape == (b2, n2, 1 + d2), out2.shape
    assert jnp.allclose(out2, ref2, atol=1e-6), "mismatch vs reference (ragged)"

    print("KERNEL_OK")
</pallas_src>

<mosaic_0001>
module attributes {stable_mosaic.version = 11 : i64} {
  func.func @_embedding_kernel(%arg0: i32, %arg1: memref<1x1xf32, #tpu.memory_space<smem>>, %arg2: memref<8x32xf32, #tpu.memory_space<vmem>>, %arg3: memref<8x33xf32, #tpu.memory_space<vmem>>) attributes {dimension_semantics = [#tpu.dimension_semantics<parallel>], iteration_bounds = array<i64: 2>, scalar_prefetch = 0 : i64, scratch_operands = 0 : i64, tpu.core_type = #tpu.core_type<tc>, window_params = [{transform_indices = @transform_0, window_bounds = array<i64: 1, 1>}, {transform_indices = @transform_1, window_bounds = array<i64: 8, 32>}, {transform_indices = @transform_2, window_bounds = array<i64: 8, 33>}]} {
    %c0 = arith.constant 0 : index
    %c0_0 = arith.constant 0 : index
    %0 = memref.load %arg1[%c0, %c0_0] : memref<1x1xf32, #tpu.memory_space<smem>>
    %1 = vector.broadcast %0 : f32 to vector<8x1xf32>
    %c0_1 = arith.constant 0 : index
    %c0_2 = arith.constant 0 : index
    %2 = vector.load %arg2[%c0_1, %c0_2] : memref<8x32xf32, #tpu.memory_space<vmem>>, vector<8x32xf32>
    %3 = tpu.concatenate %1, %2 in 1 : vector<8x1xf32>, vector<8x32xf32> -> vector<8x33xf32>
    %c0_3 = arith.constant 0 : index
    %c0_4 = arith.constant 0 : index
    %4 = vector.load %arg3[%c0_3, %c0_4] : memref<8x33xf32, #tpu.memory_space<vmem>>, vector<8x33xf32>
    tpu.vector_store %arg3[%c0_3, %c0_4], %3 {strides = array<i32>} : memref<8x33xf32, #tpu.memory_space<vmem>>, vector<8x33xf32>,
    return
  }
  func.func @transform_0(%arg0: i32) -> (i32, i32) {
    %c0_i32 = arith.constant 0 : i32
    %c0_i32_0 = arith.constant 0 : i32
    %c0_i32_1 = arith.constant 0 : i32
    return %c0_i32, %c0_i32_0 : i32, i32
  }
  func.func @transform_1(%arg0: i32) -> (i32, i32) {
    %c0_i32 = arith.constant 0 : i32
    %c0_i32_0 = arith.constant 0 : i32
    return %arg0, %c0_i32 : i32, i32
  }
  func.func @transform_2(%arg0: i32) -> (i32, i32) {
    %c0_i32 = arith.constant 0 : i32
    %c0_i32_0 = arith.constant 0 : i32
    return %arg0, %c0_i32 : i32, i32
  }
}

</mosaic_0001>

<bundles_post_ra>
// kernel: tpu_custom_call.1
= control target key start
LH: loop header
LB: loop body
LE: loop exit
PB: predicated region body
PF: predicated region fallthrough
CT: control target
= control target key end

     0   :  { %s594_s0 = inlined_call_operand.<no memory space> [shape: f32[1,1], index: 0, kind: input, shape index: {}]   ;;  %s595_s1 = inlined_call_operand.hbm [shape: f32[16,32], index: 1, kind: input, shape index: {}]   ;;  %s596_s2 = inlined_call_operand.hbm [shape: f32[16,33], index: 2, kind: output, shape index: {}]  }
   0x1   :  { %7 = sst [smem:[#allocation2]] %s594_s0 }
   0x2   :  { %8 = vsyncpa [#allocation4], 0 }
   0x3   :  { %10 = vsyncpa [#allocation4 + $0x1], 0 }
   0x4   :  { %11 = vsyncpa [#allocation5], 0 }
   0x5   :  { %13 = vsyncpa [#allocation5 + $0x1], 0  ;;  %s433_s11 = smov 0   ;;  %s435_s12 = smov 0  }
   0x6   :  { %s437_s13 = smov 0   ;;  %s439_s14 = smov 0  }
   0x7 LB: > { %s454_s0 = sadd.s32 4294967295, %s410_s14   ;;  %s255_s15 = sadd.s32 4294967294, %s410_s14   ;;  %s410_s14 = sphi %s439_s14, %s611_s14   ;;  %s406_s13 = sphi %s437_s13, %s610_s13   ;;  %s402_s12 = sphi %s435_s12, %s609_s12   ;;  %s398_s11 = sphi %s433_s11, %s608_s11  }
   0x8   : > { %s458_s16 = sadd.s32 1, %s410_s14   ;;  %s47_s17 = sadd.s32 1, %s406_s13 }
   0x9   : > { %s44_s18 = ssub.s32 %s410_s14, %s458_s16  ;;  %p54_p0 = scmp.ne.s32.totalorder %s406_s13, %s402_s12 }
   0xa   : > { %p45_p1 = scmp.eq.s32.totalorder %s44_s18, 0  ;;  %p55_p2 = scmp.eq.s32.totalorder %s410_s14, 0 }
   0xb   : > { %p60_p3 = scmp.ne.s32.totalorder %s402_s12, %s398_s11  ;;  %p61_p4 = scmp.eq.s32.totalorder %s454_s0, 0 }
   0xc   : > { %s470_s19 = scalar_select %p45_p1, %s406_s13, %s47_s17  }
   0xd   : > { %p472_p5 = por %p55_p2, %p54_p0  ;;  %p476_p6 = por %p61_p4, %p60_p3 }
   0xe   : > { %p84_p7 = scmp.eq.s32.totalorder %s454_s0, 1  ;;  %p90_p8 = scmp.eq.s32.totalorder %s255_s15, 1 }
   0xf   : > { %p279_p10 = scmp.lt.s32.totalorder %s410_s14, 2  ;;  %s113_s24 = sand.u32 1, %s406_s13  }
  0x10   : > { %p483_p11 = por %p84_p7, %p54_p0  ;;  %p487_p12 = por %p90_p8, %p60_p3 }
  0x11   : > { %s259_s25 = sshll.u32 %s410_s14, 7  ;;  %s258_s26 = sshll.u32 %s113_s24, 3 }
  0x12   : > { %s600_s22 = scalar_select %p483_p11, 1, 0 }
  0x13   : > { %s601_s23 = scalar_select %p487_p12, 1, 0 }
  0x14   : > { %s496_s29 = scalar_lea.hbm %s595_s1, %s259_s25  ;;  %s117_s30 = scalar_lea.vmem [#allocation3], %s258_s26 }
  0x15   : > { %s124_s3 = sshll.u32 %s117_s30, 4  ;;  %p500_p13 = pnand %p279_p10, %p472_p5  ;;  %s504_s3 = int_to_ptr.vmem [resolvable:$true] %s124_s3 }
  0x16   : > { %s114_s5 = scalar_lea.sflag [#allocation4], %s113_s24  ;;  %s314_s6 = scalar_lea.hbm %s496_s29, 128 }
  0x17   : > { %p315_p2 = scmp.ne.s32.totalorder %s496_s29, %s314_s6  ;;  %p316_p3 = pneg %p500_p13 }
  0x18   : > { %s319_s9 = scalar_lea.hbm %s595_s1, 256  ;;  %p320_p5 = scmp.lt.u32.totalorder %s496_s29, %s595_s1 }
  0x19   : > { %p317_p4 = pnand %p316_p3, %p315_p2  ;;  %p321_p8 = scmp.lt.u32.totalorder %s319_s9, %s314_s6 }
  0x1a   : > { %p323_p9 = scmp.lt.u32.totalorder %s314_s6, %s496_s29 }
  0x1b   : > { %p318_p7 = pneg %p317_p4  ;;  %p322_p10 = por %p321_p8, %p320_p5 }
  0x1d   : > { %p324_p0 = por %p323_p9, %p322_p10 }
  0x1f   : > { %p325_p1 = pnand %p324_p0, %p318_p7 }
  0x21   : > { %328 = shalt.err (!%p325_p1)
}
  0x22   : > { %s329_s17 = scalar_lea.vmem %s504_s3, 128  ;;  %s412_s18 = smov [#allocation3]  }
  0x23   : > { %p330_p2 = scmp.ne.s32.totalorder %s504_s3, %s329_s17  ;;  %s334_s20 = sshll.u32 %s412_s18, 4  ;;  %s335_s20 = int_to_ptr.vmem [resolvable:$false] %s334_s20 }
  0x24   : > { %s336_s24 = scalar_lea.vmem %s335_s20, 256  ;;  %p337_p11 = scmp.lt.s32.totalorder %s504_s3, %s335_s20 }
  0x25   : > { %p332_p4 = pnand %p330_p2, %p316_p3  ;;  %p338_p5 = scmp.lt.s32.totalorder %s336_s24, %s329_s17 }
  0x27   : > { %p333_p12 = pneg %p332_p4  ;;  %p339_p8 = por %p338_p5, %p337_p11 }
  0x29   : > { %p340_p9 = pnand %p339_p8, %p333_p12 }
  0x2b   : > { %343 = shalt.err (!%p340_p9)
}
  0x2c   : > { %274 = dma.hbm_to_vmem [thread:$0]  (!%p500_p13), %s496_s29, 128, %s504_s3, %s114_s5  }
  0x2d   : > { %p603_p0 = scmp.lt.s32.totalorder %s410_s14, 3  ;;  %p604_p1 = scmp.ge.s32.totalorder %s410_s14, 1 }
  0x2f   : > { %p130_p3 = pnand %p604_p1, %p603_p0 }
  0x30   : > { %s538_s25 = sand.u32 (!%p130_p3), 1, %s402_s12  }
  0x31   : > { %133 = sbr.rel (%p130_p3) target bundleno = 188 (0xbc), region = 28  ;;  %s261_s26 = sshll.u32 (!%p130_p3), %s538_s25, 3 }
  0x32   : > { %s136_s27 = scalar_lea.sflag (!%p130_p3), [#allocation4], %s538_s25  ;;  %s139_s28 = scalar_lea.vmem (!%p130_p3), [#allocation3], %s261_s26 }
  0x38   : > { %389 = dma.done.wait (%p476_p6), %s136_s27, 128  }
  0x39   : > { %391 = vsyncadd (%p476_p6), %s136_s27, 4294967168  ;;  %v162_v0 = vld [vmem:[%s139_s28] sm:$0xff]  ;;  %s413_s29 = smov 1   ;;  %s160_s30 = sld [smem:[#allocation2]]  ;;  %vm167_vm0 = vcmask 7168   ;;  %vm169_vm1 = vcmask 269312  }
  0x3a   : > { %164 = vrot.lane.b32.xlu0 %v162_v0, %s413_s29  ;;  %s264_s3 = sshll.u32 %s454_s0, 7  ;;  %s159_s4 = scalar_lea.vmem [#allocation6], %s261_s26 }
  0x3b   : > { %s185_s5 = sshll.u32 %s159_s4, 4  ;;  %s550_s8 = scalar_lea.hbm %s596_s2, %s264_s3  ;;  %s552_s5 = int_to_ptr.vmem [resolvable:$true] %s185_s5 }
  0x3c   : > { %s172_s21 = scalar_lea.sflag [#allocation5], %s538_s25  ;;  %s344_s0 = scalar_lea.vmem %s552_s5, 128 }
  0x3d   : > { %p345_p6 = scmp.ne.s32.totalorder %s552_s5, %s344_s0  ;;  %p605_p11 = scmp.ne.s32.totalorder %s600_s22, 0 }
  0x3e   : > { %s414_s9 = smov [#allocation6]  }
  0x3f   : > { %v161_v1 = vstv %s160_s30  ;;  %p346_p12 = pnand %p345_p6, %p605_p11  ;;  %s348_s10 = sshll.u32 %s414_s9, 4  ;;  %s349_s10 = int_to_ptr.vmem [resolvable:$false] %s348_s10 }
  0x40   : > { %s350_s15 = scalar_lea.vmem %s349_s10, 256  ;;  %p351_p7 = scmp.lt.s32.totalorder %s552_s5, %s349_s10 }
  0x41   : > { %p347_p13 = pneg %p346_p12  ;;  %p352_p10 = scmp.lt.s32.totalorder %s350_s15, %s344_s0 }
  0x43   : > { %p353_p2 = por %p352_p10, %p351_p7 }
  0x45   : > { %p354_p4 = pnand %p353_p2, %p347_p13 }
  0xac   : > { %v165_v2 = vpop.permute.xlu0 %164 }
  0xad   : > { %v168_v3 = vsel %vm167_vm0, %v161_v1, %v165_v2 }
  0xae   : > { %170 = vst.msk [vmem:[%s159_s4] sm:$0xff] %vm169_vm1, %v168_v3 }
  0xaf   : > { %357 = shalt.err (!%p354_p4)
}
  0xb0   : > { %s358_s17 = scalar_lea.hbm %s550_s8, 128  ;;  %s362_s24 = scalar_lea.hbm %s596_s2, 256 }
  0xb1   : > { %p359_p5 = scmp.ne.s32.totalorder %s550_s8, %s358_s17  ;;  %p363_p0 = scmp.lt.u32.totalorder %s550_s8, %s596_s2 }
  0xb2   : > { %p364_p1 = scmp.lt.u32.totalorder %s362_s24, %s358_s17  ;;  %p366_p6 = scmp.lt.u32.totalorder %s358_s17, %s550_s8 }
  0xb3   : > { %p360_p8 = pnand %p359_p5, %p605_p11 }
  0xb4   : > { %p365_p3 = por %p364_p1, %p363_p0 }
  0xb5   : > { %p361_p9 = pneg %p360_p8 }
  0xb6   : > { %p367_p12 = por %p366_p6, %p365_p3 }
  0xb8   : > { %p368_p13 = pnand %p367_p12, %p361_p9 }
  0xba   : > { %371 = shalt.err (!%p368_p13)
}
  0xbb   : > { %269 = dma.vmem_to_hbm [thread:$0]  (%p605_p11), %s552_s5, 128, %s550_s8, %s172_s21  }
  0xbc PF: > { %s197_s27 = sand.u32 1, %s398_s11   ;;  %p606_p7 = scmp.ne.s32.totalorder %s601_s23, 0 }
  0xbd   : > { %p607_p10 = scmp.ge.s32.totalorder %s410_s14, 2  ;;  %s198_s28 = scalar_lea.sflag [#allocation5], %s197_s27 }
  0xbf   : > { %p276_p2 = pnand %p607_p10, %p606_p7 }
  0xc1   : > { %393 = dma.done.wait (!%p276_p2), %s198_s28, 128  }
  0xc2   : > { %395 = vsyncadd (!%p276_p2), %s198_s28, 4294967168  ;;  %p16_p4 = scmp.ge.s32.totalorder %s458_s16, 4   ;;  %s608_s11 = smov %s402_s12 }
  0xc3   : > { %s609_s12 = smov %s406_s13  ;;  %s610_s13 = smov %s470_s19 }
  0xc4   : > { %s611_s14 = smov %s458_s16  ;;  %18 = sbr.rel (!%p16_p4) target bundleno = 7 (0x7), region = 73 }
  0xcb   :  { %203 = vsyncpa [#allocation4], 1 }
  0xcc   :  { %205 = vsyncpa [#allocation4 + $0x1], 1 }
  0xcd   :  { %206 = vsyncpa [#allocation5], 1 }
  0xce   :  { %208 = vsyncpa [#allocation5 + $0x1], 1 }

</bundles_post_ra>
